<compile_context>
chip_gen: v7x
topology: tpu7x:2x2x1
jax: 0.10.0
libtpu: 0.0.40
codegen_flags: <defaults>
</compile_context>

<pallas_src>
import functools

import jax
import jax.numpy as jnp
from jax.experimental import pallas as pl
from jax.experimental.pallas import tpu as pltpu

_LANE = 128
_TM_MAX = 128 * 1024        # (2, TM) f32 block = 1 MiB at the cap


def _cdiv(a, b):
    return -(-a // b)


def _num_tensorcores():
    """2 only where one Pallas device spans two TensorCores (v4/v5p megacore, v7x)."""
    try:
        kind = jax.devices()[0].device_kind.lower()
    except Exception:
        return 1
    return 2 if any(tag in kind for tag in ("v4", "v5p", "v7")) else 1


def _focal_loss_kernel(pa_ref, o_ref, *, gamma):
    # pa_ref: (2, TM) f32 -- row 0 = P[i, t_i] (pads = 1), row 1 = alpha[t_i] (pads = 0).
    # o_ref : (1, 1, TM) f32 per-core lane-wise partial sums, resident across axis 1.
    i = pl.program_id(1)

    @pl.when(i == 0)
    def _init():
        o_ref[...] = jnp.zeros_like(o_ref)

    probs = pa_ref[0:1, :]                       # (1, TM) lane-dense
    alpha_n = pa_ref[1:2, :]                     # (1, TM)

    om = 1.0 - probs
    g = float(gamma)
    if g.is_integer() and 0 <= g <= 8:
        gi = int(g)
        pw = jnp.ones_like(om) if gi == 0 else om
        for _ in range(max(gi - 1, 0)):
            pw = pw * om                         # VPU-only fast path (no EUP round-trip)
    else:
        pw = jnp.power(om, jnp.float32(g))

    # Padded columns: -0 * 0^g * log(1) = 0, so no masking needed.
    loss = -alpha_n * pw * jnp.log(probs)        # (1, TM), lane-dense
    o_ref[...] += loss.reshape(o_ref.shape)


def focal_loss_2d(inputs, targets, alpha=None, gamma=2.0, size_average=True,
                  block_n=None, num_cores=None):
    """inputs: (N, C) float probabilities; targets: (N,) int class ids."""
    n, c = inputs.shape
    if alpha is None:
        alpha = jnp.ones((c,), dtype=jnp.float32)
    alpha = jnp.asarray(alpha, dtype=jnp.float32).reshape(-1)
    targets = targets.astype(jnp.int32)

    # Fused XLA prologue: reads P once in its native dtype (bf16 stays bf16) and
    # emits only (N,)-sized f32 vectors. Replaces the old transpose+pad HBM pass.
    class_mask = jax.lax.broadcasted_iota(jnp.int32, (n, c), 1) == targets[:, None]
    probs = jnp.sum(jnp.where(class_mask, inputs, 0).astype(jnp.float32), axis=1)
    alpha_n = alpha[targets]
    # TODO(synk): if the producer can emit P already as (C, N) (or C is vocab-scale),
    # move this gather back into the kernel with a C grid axis instead.

    n_cores = _num_tensorcores() if num_cores is None else int(num_cores)
    n_cores = max(1, min(n_cores, _cdiv(n, _LANE)))

    # Tile size chosen AFTER n_cores so ragged batches pad by <= 127 cols/core.
    per_core = _cdiv(n, n_cores)
    cap = _TM_MAX if block_n is None else max(_LANE, (int(block_n) // _LANE) * _LANE)
    tm = max(_LANE, min(cap, _cdiv(per_core, _LANE) * _LANE))
    tiles_per_core = _cdiv(per_core, tm)
    n_pad = n_cores * tiles_per_core * tm
    pad = n_pad - n

    # Single packed side stream: row 0 = probs (pads=1 -> log=0), row 1 = alpha (pads=0).
    probs_p = jnp.pad(probs, (0, pad), constant_values=1.0)
    alpha_p = jnp.pad(alpha_n, (0, pad), constant_values=0.0)
    packed = jnp.stack([probs_p, alpha_p], axis=0)          # (2, n_pad) f32

    col_map = lambda p, i: (0, p * tiles_per_core + i)

    # VMEM budget derived from the actual buffers (double-buffered input + output
    # block), floored at 16 MiB (>= every generation's scoped default), capped at 48.
    block_bytes = 2 * tm * 4
    out_bytes = tm * 4
    vmem_limit = int(min(48 << 20, max(16 << 20, 3 * block_bytes + 2 * out_bytes + (4 << 20))))

    kernel = functools.partial(_focal_loss_kernel, gamma=float(gamma))
    partial_sums = pl.pallas_call(
        kernel,
        out_shape=jax.ShapeDtypeStruct((n_cores, 1, tm), jnp.float32),
        grid_spec=pltpu.PrefetchScalarGridSpec(
            num_scalar_prefetch=0,
            grid=(n_cores, tiles_per_core),
            in_specs=[pl.BlockSpec((2, tm), col_map)],
            out_specs=pl.BlockSpec((1, 1, tm), lambda p, i: (p, 0, 0)),
        ),
        compiler_params=pltpu.CompilerParams(
            dimension_semantics=("parallel", "arbitrary"),
            vmem_limit_bytes=vmem_limit,
        ),
        cost_estimate=pl.CostEstimate(
            flops=8 * n_pad,
            transcendentals=2 * n_pad,
            bytes_accessed=2 * n_pad * 4 + n_cores * tm * 4,
        ),
    )(packed)

    total = jnp.sum(partial_sums)                # tiny final reduce in XLA
    if size_average:
        total = total / jnp.float32(n)           # true batch size, not padded
    return total


def _reference(inputs, targets, alpha, gamma, size_average):
    n, c = inputs.shape
    mask = jax.nn.one_hot(targets, c, dtype=inputs.dtype)
    probs = jnp.sum(inputs * mask, axis=1)
    alpha_n = alpha[targets]
    batch_loss = -alpha_n * jnp.power(1.0 - probs, gamma) * jnp.log(probs)
    return jnp.mean(batch_loss) if size_average else jnp.sum(batch_loss)


if __name__ == "__main__":
    key = jax.random.PRNGKey(0)
    k1, k2, k3, k4 = jax.random.split(key, 4)

    # Case 1: module-default config at small shapes (N=8 samples, C=4 classes).
    # The module expects probabilities (it calls probs.log() directly), so feed
    # softmax-ed logits -- deterministic, built in-script.
    N, C = 8, 4
    inputs = jax.nn.softmax(jax.random.normal(k1, (N, C), dtype=jnp.float32), axis=-1)
    targets = jax.random.randint(k2, (N,), 0, C, dtype=jnp.int32)
    alpha = jnp.ones((C,), dtype=jnp.float32)    # default alpha = ones(class_num)

    loss = jax.block_until_ready(
        focal_loss_2d(inputs, targets, alpha=alpha, gamma=2.0, size_average=True))
    ref = _reference(inputs, targets, alpha, 2.0, True)
    assert jnp.allclose(loss, ref, rtol=1e-5, atol=1e-5), (loss, ref)

    # Case 2: ragged batch, sum reduction, forced small tiles + 2 output slots to
    # exercise multi-step accumulation across the "arbitrary" axis and padding.
    N2, C2 = 3000, 5
    inputs2 = jax.nn.softmax(jax.random.normal(k3, (N2, C2), dtype=jnp.float32), axis=-1)
    targets2 = jax.random.randint(k4, (N2,), 0, C2, dtype=jnp.int32)

    loss2 = jax.block_until_ready(
        focal_loss_2d(inputs2, targets2, alpha=None, gamma=2.0, size_average=False,
                      block_n=256, num_cores=2))
    ref2 = _reference(inputs2, targets2, jnp.ones((C2,), jnp.float32), 2.0, False)
    assert jnp.allclose(loss2, ref2, rtol=1e-4, atol=1e-2), (loss2, ref2)

    # Case 3: default auto-tiling path (one large tile per core) with mean.
    loss3 = jax.block_until_ready(
        focal_loss_2d(inputs2, targets2, alpha=None, gamma=2.0, size_average=True))
    ref3 = _reference(inputs2, targets2, jnp.ones((C2,), jnp.float32), 2.0, True)
    assert jnp.allclose(loss3, ref3, rtol=1e-5, atol=1e-5), (loss3, ref3)

    print("KERNEL_OK")
</pallas_src>

<mosaic_0001>
module attributes {stable_mosaic.version = 11 : i64} {
  func.func @_focal_loss_kernel(%arg0: i32, %arg1: i32, %arg2: memref<2x128xf32, #tpu.memory_space<vmem>>, %arg3: memref<1x1x128xf32, #tpu.memory_space<vmem>>) attributes {dimension_semantics = [#tpu.dimension_semantics<parallel>, #tpu.dimension_semantics<arbitrary>], iteration_bounds = array<i64: 1, 1>, scalar_prefetch = 0 : i64, scratch_operands = 0 : i64, tpu.core_type = #tpu.core_type<tc>, window_params = [{transform_indices = @transform_0, window_bounds = array<i64: 2, 128>}, {transform_indices = @transform_1, window_bounds = array<i64: 1, 1, 128>}]} {
    %c0_i32 = arith.constant 0 : i32
    %0 = arith.cmpi eq, %arg1, %c0_i32 : i32
    %1 = arith.extui %0 : i1 to i32
    %c0_i32_0 = arith.constant 0 : i32
    %2 = arith.cmpi ne, %1, %c0_i32_0 : i32
    scf.if %2 {
      %cst_10 = arith.constant 0.000000e+00 : f32
      %17 = vector.broadcast %cst_10 : f32 to vector<1x1x128xf32>
      %c0_11 = arith.constant 0 : index
      %c0_12 = arith.constant 0 : index
      %c0_13 = arith.constant 0 : index
      %18 = vector.load %arg3[%c0_11, %c0_12, %c0_13] : memref<1x1x128xf32, #tpu.memory_space<vmem>>, vector<1x1x128xf32>
      tpu.vector_store %arg3[%c0_11, %c0_12, %c0_13], %17 {strides = array<i32>} : memref<1x1x128xf32, #tpu.memory_space<vmem>>, vector<1x1x128xf32>,
    } else {
    }
    %c0 = arith.constant 0 : index
    %c0_1 = arith.constant 0 : index
    %3 = vector.load %arg2[%c0, %c0_1] : memref<2x128xf32, #tpu.memory_space<vmem>>, vector<1x128xf32>
    %c1 = arith.constant 1 : index
    %c0_2 = arith.constant 0 : index
    %4 = vector.load %arg2[%c1, %c0_2] : memref<2x128xf32, #tpu.memory_space<vmem>>, vector<1x128xf32>
    %cst = arith.constant 1.000000e+00 : f32
    %5 = vector.broadcast %cst : f32 to vector<1x128xf32>
    %6 = arith.subf %5, %3 : vector<1x128xf32>
    %7 = arith.mulf %6, %6 : vector<1x128xf32>
    %cst_3 = arith.constant 0.000000e+00 : f32
    %8 = vector.broadcast %cst_3 : f32 to vector<1x128xf32>
    %9 = arith.subf %8, %4 : vector<1x128xf32>
    %10 = arith.mulf %9, %7 : vector<1x128xf32>
    %11 = math.log %3 : vector<1x128xf32>
    %12 = arith.mulf %10, %11 : vector<1x128xf32>
    %c0_4 = arith.constant 0 : index
    %c0_5 = arith.constant 0 : index
    %c0_6 = arith.constant 0 : index
    %13 = vector.load %arg3[%c0_4, %c0_5, %c0_6] : memref<1x1x128xf32, #tpu.memory_space<vmem>>, vector<1x1x128xf32>
    %14 = vector.shape_cast %12 : vector<1x128xf32> to vector<1x1x128xf32>
    %15 = arith.addf %13, %14 : vector<1x1x128xf32>
    %c0_7 = arith.constant 0 : index
    %c0_8 = arith.constant 0 : index
    %c0_9 = arith.constant 0 : index
    %16 = vector.load %arg3[%c0_7, %c0_8, %c0_9] : memref<1x1x128xf32, #tpu.memory_space<vmem>>, vector<1x1x128xf32>
    tpu.vector_store %arg3[%c0_7, %c0_8, %c0_9], %15 {strides = array<i32>} : memref<1x1x128xf32, #tpu.memory_space<vmem>>, vector<1x1x128xf32>,
    return
  }
  func.func @transform_0(%arg0: i32, %arg1: i32) -> (i32, i32) {
    %c1_i32 = arith.constant 1 : i32
    %0 = arith.muli %arg0, %c1_i32 : i32
    %1 = arith.addi %0, %arg1 : i32
    %c0_i32 = arith.constant 0 : i32
    %c0_i32_0 = arith.constant 0 : i32
    return %c0_i32, %1 : i32, i32
  }
  func.func @transform_1(%arg0: i32, %arg1: i32) -> (i32, i32, i32) {
    %c0_i32 = arith.constant 0 : i32
    %c0_i32_0 = arith.constant 0 : i32
    %c0_i32_1 = arith.constant 0 : i32
    return %arg0, %c0_i32, %c0_i32_0 : i32, i32, i32
  }
}

</mosaic_0001>

<bundles_post_ra>
// kernel: tpu_custom_call.1
= control target key start
LH: loop header
LB: loop body
LE: loop exit
PB: predicated region body
PF: predicated region fallthrough
CT: control target
= control target key end

     0   :  { %6 = vsyncpa [#allocation3], 0  ;;  %s147_s0 = inlined_call_operand.hbm [shape: f32[2,128], index: 0, kind: input, shape index: {}]   ;;  %s148_s1 = inlined_call_operand.hbm [shape: f32[1,1,128], index: 1, kind: output, shape index: {}]  }
   0x1   :  { %7 = vsyncpa [#allocation4], 0  ;;  %s110_s6 = smov [#allocation2]   ;;  %s62_s10 = scalar_lea.hbm %s147_s0, 32 }
   0x2   :  { %s17_s7 = sshll.u32 %s110_s6, 4  ;;  %p63_p0 = scmp.ne.s32.totalorder %s147_s0, %s62_s10  ;;  %s18_s7 = int_to_ptr.vmem [resolvable:$true] %s17_s7 }
   0x3   :  { %p66_p1 = scmp.lt.u32.totalorder %s62_s10, %s147_s0 }
   0x5   :  { %p68_p2 = pnand %p66_p1, %p63_p0 }
   0x7   :  { %71 = shalt.err (!%p68_p2)
}
   0x8   :  { %s72_s15 = scalar_lea.vmem %s18_s7, 32  ;;  %p77_p4 = scmp.lt.s32.totalorder %s18_s7, %s18_s7 }
   0x9   :  { %p73_p3 = scmp.ne.s32.totalorder %s18_s7, %s72_s15  ;;  %p78_p5 = scmp.lt.s32.totalorder %s72_s15, %s72_s15 }
   0xb   :  { %p79_p6 = por %p78_p5, %p77_p4 }
   0xd   :  { %p80_p7 = pnand %p79_p6, %p73_p3 }
   0xf   :  { %83 = shalt.err (!%p80_p7)
}
  0x10   :  { %20 = dma.hbm_to_vmem [thread:$0]  %s147_s0, 32, %s18_s7, [#allocation3]  }
  0x11   :  { %106 = dma.done.wait [#allocation3], 32  }
  0x12   :  { %107 = vsyncadd [#allocation3], 4294967264  ;;  %v111_v0 = vmov 0.0   ;;  %v30_v1 = vld [vmem:[#allocation2] sm:$0x1]  ;;  %s112_s18 = smov [#allocation5]  }
  0x13   :  { %29 = vst [vmem:[#allocation5] sm:$0x1] %v111_v0  ;;  %60 = vlog2.f32 %v30_v1  ;;  %v32_v2 = vsub.f32 1.0, %v30_v1  ;;  %v31_v3 = vld [vmem:[#allocation2 + $0x1] sm:$0x1]  ;;  %s48_s19 = sshll.u32 %s112_s18, 4  ;;  %s49_s19 = int_to_ptr.vmem [resolvable:$true] %s48_s19 }
  0x14   :  { %v34_v5 = vsub.f32 0.0, %v31_v3  ;;  %s84_s0 = scalar_lea.vmem %s49_s19, 16  ;;  %s88_s20 = scalar_lea.vmem %s49_s19, 32 }
  0x15   :  { %v33_v4 = vmul.f32 %v32_v2, %v32_v2  ;;  %p85_p8 = scmp.ne.s32.totalorder %s49_s19, %s84_s0  ;;  %p89_p9 = scmp.lt.s32.totalorder %s49_s19, %s49_s19 }
  0x16   :  { %p90_p10 = scmp.lt.s32.totalorder %s88_s20, %s84_s0 }
  0x17   :  { %v35_v6 = vmul.f32 %v34_v5, %v33_v4 }
  0x18   :  { %p91_p11 = por %p90_p10, %p89_p9 }
  0x1a   :  { %v39_v9 = vld [vmem:[#allocation5] sm:$0x1]  ;;  %p92_p12 = pnand %p91_p11, %p85_p8 }
  0x1d   :  { %v61_v7 = vpop.eup %60 }
  0x1e   :  { %v37_v8 = vmul.f32 0.6931472, %v61_v7 }
  0x20   :  { %v38_v10 = vmul.f32 %v37_v8, %v35_v6 }
  0x22   :  { %v40_v11 = vadd.f32 %v39_v9, %v38_v10 }
  0x24   :  { %41 = vst [vmem:[#allocation5] sm:$0x1] %v40_v11 }
  0x25   :  { %95 = shalt.err (!%p92_p12)
}
  0x26   :  { %s96_s23 = scalar_lea.hbm %s148_s1, 16 }
  0x27   :  { %p97_p13 = scmp.ne.s32.totalorder %s148_s1, %s96_s23  ;;  %p100_p0 = scmp.lt.u32.totalorder %s96_s23, %s148_s1 }
  0x29   :  { %p102_p1 = pnand %p100_p0, %p97_p13 }
  0x2b   :  { %105 = shalt.err (!%p102_p1)
}
  0x2c   :  { %51 = dma.vmem_to_hbm [thread:$0]  %s49_s19, 16, %s148_s1, [#allocation4]  }
  0x2d   :  { %108 = dma.done.wait [#allocation4], 16  }
  0x2e   :  { %109 = vsyncadd [#allocation4], 4294967280 }
  0x2f   :  { %55 = vsyncpa [#allocation3], 1 }
  0x30   :  { %56 = vsyncpa [#allocation4], 1 }

</bundles_post_ra>
